<compile_context>
chip_gen: v7x
topology: tpu7x:2x2x1
jax: 0.10.0
libtpu: 0.0.40
codegen_flags: <defaults>
</compile_context>

<pallas_src>
import math

import jax
import jax.numpy as jnp
from jax.experimental import pallas as pl
from jax.experimental.pallas import tpu as pltpu

TIME_STEP = 4
VTH = 0.6
TAU = 0.25

LANE = 128
MAX_TILE_ROWS = 2048                   # (4, 2048, 128) f32 block = 4 MiB
VMEM_LIMIT_BYTES = 40 * 1024 * 1024    # safe on v5e/v6e (128 MiB phys) and v7x (64 MiB phys)


def _lif_kernel(x_ref, o_ref):
    # One grid step = one row tile across ALL timesteps. `u` stays on-chip.
    u = x_ref[0].astype(jnp.float32)            # t == 0: u = tau*0 + x
    for t in range(TIME_STEP):                  # static unroll (TIME_STEP = 4)
        if t > 0:
            u = TAU * u + x_ref[t].astype(jnp.float32)
        spike = u > VTH
        o_ref[t] = spike.astype(o_ref.dtype)
        if t + 1 < TIME_STEP:                   # u written at the last step is never read
            u = jnp.where(spike, u - VTH, u)    # soft reset: u - out*Vth


def _round_up(v, k):
    return ((v + k - 1) // k) * k


def lif_forward(x):
    """x: (TimeStep*bs, C, H, W), any float dtype -> (TimeStep*bs, C, H, W) float32 spikes."""
    orig_shape = x.shape
    total_bs = orig_shape[0]
    assert total_bs % TIME_STEP == 0, "leading dim must be divisible by TimeStep"
    bs = total_bs // TIME_STEP

    m = bs * math.prod(orig_shape[1:])
    rows = pl.cdiv(m, LANE)
    m_pad = rows * LANE

    # Row tiling: >=2 tiles (and even count) when possible so v7x megacore keeps
    # both TCs busy; tiles are a multiple of 8 sublanes; the (possible) ragged
    # last row tile is clipped by Pallas instead of padding rows.
    min_tiles = 2 if rows >= 16 else 1
    num_tiles = max(min_tiles, pl.cdiv(rows, MAX_TILE_ROWS))
    if num_tiles > 1 and num_tiles % 2:
        num_tiles += 1
    tile_rows = _round_up(pl.cdiv(rows, num_tiles), 8)
    num_row_tiles = pl.cdiv(rows, tile_rows)

    # No wrapper-side dtype cast; the kernel upcasts in vregs (free on the VPU).
    x_flat = x.reshape(TIME_STEP, m)
    if m_pad != m:
        # Only when m % 128 != 0 (uncommon for conv feature maps). Zero padding
        # is harmless: 0 > 0.6 is False, so padded lanes never spike.
        x_flat = jnp.pad(x_flat, ((0, 0), (0, m_pad - m)))
    x_tiled = x_flat.reshape(TIME_STEP, rows, LANE)

    cost = pl.CostEstimate(
        flops=4 * TIME_STEP * m_pad,
        transcendentals=0,
        bytes_accessed=TIME_STEP * m_pad * (x.dtype.itemsize + 4),
    )

    out = pl.pallas_call(
        _lif_kernel,
        out_shape=jax.ShapeDtypeStruct((TIME_STEP, rows, LANE), jnp.float32),
        grid_spec=pltpu.PrefetchScalarGridSpec(
            num_scalar_prefetch=0,
            grid=(num_row_tiles,),
            in_specs=[pl.BlockSpec((TIME_STEP, tile_rows, LANE), lambda r: (0, r, 0))],
            out_specs=pl.BlockSpec((TIME_STEP, tile_rows, LANE), lambda r: (0, r, 0)),
        ),
        compiler_params=pltpu.CompilerParams(
            # Time is fused into the body, so the whole grid is independent work.
            dimension_semantics=("parallel",),
            vmem_limit_bytes=VMEM_LIMIT_BYTES,
        ),
        cost_estimate=cost,
    )(x_tiled)

    out = out.reshape(TIME_STEP, m_pad)
    if m_pad != m:
        out = out[:, :m]
    return out.reshape(orig_shape)


def lif_reference(x):
    """Pure-JAX reference matching the PyTorch module semantics."""
    x = x.astype(jnp.float32)
    bs = x.shape[0] // TIME_STEP
    u = jnp.zeros((bs,) + x.shape[1:], jnp.float32)
    outs = []
    for t in range(TIME_STEP):
        inp = x[t * bs:(t + 1) * bs]
        u = TAU * u + inp
        out = (u > VTH).astype(jnp.float32)
        u = u - out * VTH
        outs.append(out)
    return jnp.concatenate(outs, axis=0)


# TODO(synk): SpikeFunction.backward (rectangular surrogate gradient) is training-only;
# this kernel implements the forward pass only.

if __name__ == "__main__":
    key = jax.random.PRNGKey(0)
    bs, C, H, W = 2, 4, 16, 16
    x = jax.random.normal(key, (TIME_STEP * bs, C, H, W), dtype=jnp.float32)

    y = jax.block_until_ready(lif_forward(x))
    y_ref = lif_reference(x)

    assert y.shape == x.shape and y.dtype == jnp.float32
    assert jnp.array_equal(y, y_ref), "mismatch vs reference"
    print("KERNEL_OK")
</pallas_src>

<mosaic_0001>
module attributes {stable_mosaic.version = 11 : i64} {
  func.func @_lif_kernel(%arg0: i32, %arg1: memref<4x8x128xf32, #tpu.memory_space<vmem>>, %arg2: memref<4x8x128xf32, #tpu.memory_space<vmem>>) attributes {dimension_semantics = [#tpu.dimension_semantics<parallel>], iteration_bounds = array<i64: 2>, scalar_prefetch = 0 : i64, scratch_operands = 0 : i64, tpu.core_type = #tpu.core_type<tc>, window_params = [{transform_indices = @transform_0, window_bounds = array<i64: 4, 8, 128>}, {transform_indices = @transform_1, window_bounds = array<i64: 4, 8, 128>}]} {
    %c0 = arith.constant 0 : index
    %c0_0 = arith.constant 0 : index
    %c0_1 = arith.constant 0 : index
    %0 = vector.load %arg1[%c0, %c0_0, %c0_1] : memref<4x8x128xf32, #tpu.memory_space<vmem>>, vector<1x8x128xf32>
    %1 = vector.shape_cast %0 : vector<1x8x128xf32> to vector<8x128xf32>
    %cst = arith.constant 6.000000e-01 : f32
    %2 = vector.broadcast %cst : f32 to vector<8x128xf32>
    %3 = arith.cmpf ogt, %1, %2 : vector<8x128xf32>
    %4 = arith.extui %3 : vector<8x128xi1> to vector<8x128xi32>
    %5 = arith.sitofp %4 : vector<8x128xi32> to vector<8x128xf32>
    %c0_2 = arith.constant 0 : index
    %c0_3 = arith.constant 0 : index
    %c0_4 = arith.constant 0 : index
    %6 = vector.load %arg2[%c0_2, %c0_3, %c0_4] : memref<4x8x128xf32, #tpu.memory_space<vmem>>, vector<1x8x128xf32>
    %7 = vector.shape_cast %6 : vector<1x8x128xf32> to vector<8x128xf32>
    %8 = vector.shape_cast %5 : vector<8x128xf32> to vector<1x8x128xf32>
    tpu.vector_store %arg2[%c0_2, %c0_3, %c0_4], %8 {strides = array<i32>} : memref<4x8x128xf32, #tpu.memory_space<vmem>>, vector<1x8x128xf32>,
    %cst_5 = arith.constant 6.000000e-01 : f32
    %9 = vector.broadcast %cst_5 : f32 to vector<8x128xf32>
    %10 = arith.subf %1, %9 : vector<8x128xf32>
    %11 = arith.select %3, %10, %1 : vector<8x128xi1>, vector<8x128xf32>
    %cst_6 = arith.constant 2.500000e-01 : f32
    %12 = vector.broadcast %cst_6 : f32 to vector<8x128xf32>
    %13 = arith.mulf %12, %11 : vector<8x128xf32>
    %c1 = arith.constant 1 : index
    %c0_7 = arith.constant 0 : index
    %c0_8 = arith.constant 0 : index
    %14 = vector.load %arg1[%c1, %c0_7, %c0_8] : memref<4x8x128xf32, #tpu.memory_space<vmem>>, vector<1x8x128xf32>
    %15 = vector.shape_cast %14 : vector<1x8x128xf32> to vector<8x128xf32>
    %16 = arith.addf %13, %15 : vector<8x128xf32>
    %cst_9 = arith.constant 6.000000e-01 : f32
    %17 = vector.broadcast %cst_9 : f32 to vector<8x128xf32>
    %18 = arith.cmpf ogt, %16, %17 : vector<8x128xf32>
    %19 = arith.extui %18 : vector<8x128xi1> to vector<8x128xi32>
    %20 = arith.sitofp %19 : vector<8x128xi32> to vector<8x128xf32>
    %c1_10 = arith.constant 1 : index
    %c0_11 = arith.constant 0 : index
    %c0_12 = arith.constant 0 : index
    %21 = vector.load %arg2[%c1_10, %c0_11, %c0_12] : memref<4x8x128xf32, #tpu.memory_space<vmem>>, vector<1x8x128xf32>
    %22 = vector.shape_cast %21 : vector<1x8x128xf32> to vector<8x128xf32>
    %23 = vector.shape_cast %20 : vector<8x128xf32> to vector<1x8x128xf32>
    tpu.vector_store %arg2[%c1_10, %c0_11, %c0_12], %23 {strides = array<i32>} : memref<4x8x128xf32, #tpu.memory_space<vmem>>, vector<1x8x128xf32>,
    %cst_13 = arith.constant 6.000000e-01 : f32
    %24 = vector.broadcast %cst_13 : f32 to vector<8x128xf32>
    %25 = arith.subf %16, %24 : vector<8x128xf32>
    %26 = arith.select %18, %25, %16 : vector<8x128xi1>, vector<8x128xf32>
    %cst_14 = arith.constant 2.500000e-01 : f32
    %27 = vector.broadcast %cst_14 : f32 to vector<8x128xf32>
    %28 = arith.mulf %27, %26 : vector<8x128xf32>
    %c2 = arith.constant 2 : index
    %c0_15 = arith.constant 0 : index
    %c0_16 = arith.constant 0 : index
    %29 = vector.load %arg1[%c2, %c0_15, %c0_16] : memref<4x8x128xf32, #tpu.memory_space<vmem>>, vector<1x8x128xf32>
    %30 = vector.shape_cast %29 : vector<1x8x128xf32> to vector<8x128xf32>
    %31 = arith.addf %28, %30 : vector<8x128xf32>
    %cst_17 = arith.constant 6.000000e-01 : f32
    %32 = vector.broadcast %cst_17 : f32 to vector<8x128xf32>
    %33 = arith.cmpf ogt, %31, %32 : vector<8x128xf32>
    %34 = arith.extui %33 : vector<8x128xi1> to vector<8x128xi32>
    %35 = arith.sitofp %34 : vector<8x128xi32> to vector<8x128xf32>
    %c2_18 = arith.constant 2 : index
    %c0_19 = arith.constant 0 : index
    %c0_20 = arith.constant 0 : index
    %36 = vector.load %arg2[%c2_18, %c0_19, %c0_20] : memref<4x8x128xf32, #tpu.memory_space<vmem>>, vector<1x8x128xf32>
    %37 = vector.shape_cast %36 : vector<1x8x128xf32> to vector<8x128xf32>
    %38 = vector.shape_cast %35 : vector<8x128xf32> to vector<1x8x128xf32>
    tpu.vector_store %arg2[%c2_18, %c0_19, %c0_20], %38 {strides = array<i32>} : memref<4x8x128xf32, #tpu.memory_space<vmem>>, vector<1x8x128xf32>,
    %cst_21 = arith.constant 6.000000e-01 : f32
    %39 = vector.broadcast %cst_21 : f32 to vector<8x128xf32>
    %40 = arith.subf %31, %39 : vector<8x128xf32>
    %41 = arith.select %33, %40, %31 : vector<8x128xi1>, vector<8x128xf32>
    %cst_22 = arith.constant 2.500000e-01 : f32
    %42 = vector.broadcast %cst_22 : f32 to vector<8x128xf32>
    %43 = arith.mulf %42, %41 : vector<8x128xf32>
    %c3 = arith.constant 3 : index
    %c0_23 = arith.constant 0 : index
    %c0_24 = arith.constant 0 : index
    %44 = vector.load %arg1[%c3, %c0_23, %c0_24] : memref<4x8x128xf32, #tpu.memory_space<vmem>>, vector<1x8x128xf32>
    %45 = vector.shape_cast %44 : vector<1x8x128xf32> to vector<8x128xf32>
    %46 = arith.addf %43, %45 : vector<8x128xf32>
    %cst_25 = arith.constant 6.000000e-01 : f32
    %47 = vector.broadcast %cst_25 : f32 to vector<8x128xf32>
    %48 = arith.cmpf ogt, %46, %47 : vector<8x128xf32>
    %49 = arith.extui %48 : vector<8x128xi1> to vector<8x128xi32>
    %50 = arith.sitofp %49 : vector<8x128xi32> to vector<8x128xf32>
    %c3_26 = arith.constant 3 : index
    %c0_27 = arith.constant 0 : index
    %c0_28 = arith.constant 0 : index
    %51 = vector.load %arg2[%c3_26, %c0_27, %c0_28] : memref<4x8x128xf32, #tpu.memory_space<vmem>>, vector<1x8x128xf32>
    %52 = vector.shape_cast %51 : vector<1x8x128xf32> to vector<8x128xf32>
    %53 = vector.shape_cast %50 : vector<8x128xf32> to vector<1x8x128xf32>
    tpu.vector_store %arg2[%c3_26, %c0_27, %c0_28], %53 {strides = array<i32>} : memref<4x8x128xf32, #tpu.memory_space<vmem>>, vector<1x8x128xf32>,
    return
  }
  func.func @transform_0(%arg0: i32) -> (i32, i32, i32) {
    %c0_i32 = arith.constant 0 : i32
    %c0_i32_0 = arith.constant 0 : i32
    %c0_i32_1 = arith.constant 0 : i32
    return %c0_i32, %arg0, %c0_i32_0 : i32, i32, i32
  }
  func.func @transform_1(%arg0: i32) -> (i32, i32, i32) {
    %c0_i32 = arith.constant 0 : i32
    %c0_i32_0 = arith.constant 0 : i32
    %c0_i32_1 = arith.constant 0 : i32
    return %c0_i32, %arg0, %c0_i32_0 : i32, i32, i32
  }
}

</mosaic_0001>

<bundles_post_ra>
// kernel: tpu_custom_call.1
= control target key start
LH: loop header
LB: loop body
LE: loop exit
PB: predicated region body
PF: predicated region fallthrough
CT: control target
= control target key end

     0   :  { %6 = vsyncpa [#allocation3], 0  ;;  %s617_s0 = inlined_call_operand.hbm [shape: f32[4,16,128], index: 0, kind: input, shape index: {}]   ;;  %s618_s1 = inlined_call_operand.hbm [shape: f32[4,16,128], index: 1, kind: output, shape index: {}]  }
   0x1   :  { %8 = vsyncpa [#allocation3 + $0x1], 0 }
   0x2   :  { %9 = vsyncpa [#allocation4], 0 }
   0x3   :  { %11 = vsyncpa [#allocation4 + $0x1], 0  ;;  %s453_s6 = smov 0   ;;  %s455_s7 = smov 0  }
   0x4   :  { %s457_s8 = smov 0   ;;  %s459_s9 = smov 0  }
   0x5 LB: > { %s474_s10 = sadd.s32 4294967295, %s432_s9   ;;  %s258_s11 = sadd.s32 4294967294, %s432_s9   ;;  %s432_s9 = sphi %s459_s9, %s632_s9   ;;  %s428_s8 = sphi %s457_s8, %s631_s8   ;;  %s424_s7 = sphi %s455_s7, %s630_s7   ;;  %s420_s6 = sphi %s453_s6, %s629_s6  }
   0x6   : > { %s478_s12 = sadd.s32 1, %s432_s9   ;;  %s24_s13 = sadd.s32 1, %s428_s8 }
   0x7   : > { %s21_s14 = ssub.s32 %s432_s9, %s478_s12  ;;  %p31_p0 = scmp.ne.s32.totalorder %s428_s8, %s424_s7 }
   0x8   : > { %p22_p1 = scmp.eq.s32.totalorder %s21_s14, 0  ;;  %p32_p2 = scmp.eq.s32.totalorder %s432_s9, 0 }
   0x9   : > { %p37_p3 = scmp.ne.s32.totalorder %s424_s7, %s420_s6  ;;  %p38_p4 = scmp.eq.s32.totalorder %s474_s10, 0 }
   0xa   : > { %s490_s15 = scalar_select %p22_p1, %s428_s8, %s24_s13  }
   0xb   : > { %p492_p5 = por %p32_p2, %p31_p0  ;;  %p496_p6 = por %p38_p4, %p37_p3 }
   0xc   : > { %p61_p7 = scmp.eq.s32.totalorder %s474_s10, 1  ;;  %p67_p8 = scmp.eq.s32.totalorder %s258_s11, 1 }
   0xd   : > { %p295_p10 = scmp.lt.s32.totalorder %s432_s9, 2  ;;  %s87_s20 = sand.u32 1, %s428_s8  }
   0xe   : > { %p503_p11 = por %p61_p7, %p31_p0  ;;  %p507_p12 = por %p67_p8, %p37_p3 }
   0xf   : > { %s262_s21 = sshll.u32 %s432_s9, 7  ;;  %s261_s22 = sshll.u32 %s87_s20, 5 }
  0x10   : > { %s622_s18 = scalar_select %p503_p11, 1, 0 }
  0x11   : > { %s623_s19 = scalar_select %p507_p12, 1, 0 }
  0x12   : > { %s516_s25 = scalar_lea.hbm %s617_s0, %s262_s21  ;;  %s91_s26 = scalar_lea.vmem [#allocation2], %s261_s22 }
  0x13   : > { %s97_s27 = sshll.u32 %s91_s26, 4  ;;  %p520_p13 = pnand %p295_p10, %p492_p5  ;;  %s524_s27 = int_to_ptr.vmem [resolvable:$true] %s97_s27 }
  0x14   : > { %s527_s29 = scalar_lea.sflag [#allocation3], %s87_s20  ;;  %s336_s30 = scalar_lea.hbm %s516_s25, 512 }
  0x15   : > { %p337_p1 = scmp.ne.s32.totalorder %s516_s25, %s336_s30  ;;  %p338_p2 = pneg %p520_p13 }
  0x16   : > { %s341_s4 = scalar_lea.hbm %s617_s0, 1024  ;;  %p342_p5 = scmp.lt.u32.totalorder %s516_s25, %s617_s0 }
  0x17   : > { %p339_p3 = pnand %p338_p2, %p337_p1  ;;  %p343_p7 = scmp.lt.u32.totalorder %s341_s4, %s336_s30 }
  0x18   : > { %p345_p10 = scmp.lt.u32.totalorder %s336_s30, %s516_s25 }
  0x19   : > { %p340_p4 = pneg %p339_p3  ;;  %p344_p8 = por %p343_p7, %p342_p5 }
  0x1b   : > { %p346_p9 = por %p345_p10, %p344_p8 }
  0x1d   : > { %p347_p0 = pnand %p346_p9, %p340_p4 }
  0x1f   : > { %350 = shalt.err (!%p347_p0)
}
  0x20   : > { %s351_s13 = scalar_lea.vmem %s524_s27, 512  ;;  %s434_s14 = smov [#allocation2]  }
  0x21   : > { %p352_p1 = scmp.ne.s32.totalorder %s524_s27, %s351_s13  ;;  %s356_s16 = sshll.u32 %s434_s14, 4  ;;  %s357_s16 = int_to_ptr.vmem [resolvable:$false] %s356_s16 }
  0x22   : > { %s358_s20 = scalar_lea.vmem %s357_s16, 1024  ;;  %p359_p11 = scmp.lt.s32.totalorder %s524_s27, %s357_s16 }
  0x23   : > { %p354_p3 = pnand %p352_p1, %p338_p2  ;;  %p360_p5 = scmp.lt.s32.totalorder %s358_s20, %s351_s13 }
  0x25   : > { %p355_p12 = pneg %p354_p3  ;;  %p361_p7 = por %p360_p5, %p359_p11 }
  0x27   : > { %p362_p8 = pnand %p361_p7, %p355_p12 }
  0x29   : > { %365 = shalt.err (!%p362_p8)
}
  0x2a   : > { %s435_s21 = smov 256   ;;  %s436_s22 = smov 128  }
  0x2b   : > { %s437_s23 = smov 8   ;;  %p105_p9 = scmp.lt.s32.totalorder %s432_s9, 3 }
  0x2c   : > { %290 = dma.hbm_to_vmem [thread:$0]  (!%p520_p13), %s516_s25, 512, %s524_s27, %s527_s29, %s435_s21, %s436_s22, %s437_s23  }
  0x2d   : > { %p625_p0 = scmp.ge.s32.totalorder %s432_s9, 1 }
  0x2f   : > { %p106_p2 = pnand %p625_p0, %p105_p9 }
  0x30   : > { %s559_s24 = sand.u32 (!%p106_p2), 1, %s424_s7  }
  0x31   : > { %109 = sbr.rel (%p106_p2) target bundleno = 97 (0x61), region = 24  ;;  %s264_s26 = sshll.u32 (!%p106_p2), %s559_s24, 5 }
  0x32   : > { %s112_s30 = scalar_lea.sflag (!%p106_p2), [#allocation3], %s559_s24  ;;  %s115_s2 = scalar_lea.vmem (!%p106_p2), [#allocation2], %s264_s26 }
  0x38   : > { %411 = dma.done.wait (%p496_p6), %s112_s30, 512  }
  0x39   : > { %413 = vsyncadd (%p496_p6), %s112_s30, 4294966784  ;;  %v134_v0 = vld [vmem:[%s115_s2] sm:$0xff]  ;;  %v438_v2 = vmov 0.0   ;;  %s133_s25 = scalar_lea.vmem [#allocation5], %s264_s26  ;;  %v268_v5 = vld [vmem:[%s115_s2 + $0x8] sm:$0xff]  ;;  %s280_s27 = sshll.u32 %s474_s10, 7 }
  0x3a   : > { %vm135_vm0 = vcmp.gt.f32.partialorder %v134_v0, 0.6  ;;  %v267_v1 = vadd.f32 -0.6, %v134_v0  ;;  %v272_v11 = vld [vmem:[%s115_s2 + $0x10] sm:$0xff]  ;;  %s185_s17 = sshll.u32 %s133_s25, 4  ;;  %s573_s3 = scalar_lea.hbm %s618_s1, %s280_s27  ;;  %s568_s17 = int_to_ptr.vmem [resolvable:$true] %s185_s17 }
  0x3b   : > { %v266_v3 = vsel %vm135_vm0, 1.0, %v438_v2  ;;  %v276_v17 = vld [vmem:[%s115_s2 + $0x18] sm:$0xff]  ;;  %s173_s4 = scalar_lea.sflag [#allocation4], %s559_s24  ;;  %s366_s5 = scalar_lea.vmem %s568_s17, 512 }
  0x3c   : > { %138 = vst [vmem:[%s133_s25] sm:$0xff] %v266_v3  ;;  %v140_v4 = vsel %vm135_vm0, %v267_v1, %v134_v0  ;;  %p367_p6 = scmp.ne.s32.totalorder %s568_s17, %s366_s5  ;;  %p626_p11 = scmp.ne.s32.totalorder %s622_s18, 0 }
  0x3d   : > { %v141_v6 = vmul.f32 0.25, %v140_v4  ;;  %s439_s10 = smov [#allocation5]  }
  0x3e   : > { %p368_p12 = pnand %p367_p6, %p626_p11  ;;  %s370_s11 = sshll.u32 %s439_s10, 4  ;;  %s371_s11 = int_to_ptr.vmem [resolvable:$false] %s370_s11 }
  0x3f   : > { %v144_v7 = vadd.f32 %v268_v5, %v141_v6  ;;  %s372_s13 = scalar_lea.vmem %s371_s11, 1024  ;;  %p373_p4 = scmp.lt.s32.totalorder %s568_s17, %s371_s11 }
  0x40   : > { %p369_p13 = pneg %p368_p12  ;;  %p374_p10 = scmp.lt.s32.totalorder %s372_s13, %s366_s5 }
  0x41   : > { %vm145_vm1 = vcmp.gt.f32.partialorder %v144_v7, 0.6  ;;  %v271_v8 = vadd.f32 -0.6, %v144_v7 }
  0x42   : > { %v269_v9 = vsel %vm145_vm1, 1.0, %v438_v2  ;;  %p375_p1 = por %p374_p10, %p373_p4 }
  0x43   : > { %270 = vst [vmem:[%s133_s25 + $0x8] sm:$0xff] %v269_v9  ;;  %v151_v10 = vsel %vm145_vm1, %v271_v8, %v144_v7 }
  0x44   : > { %v152_v12 = vmul.f32 0.25, %v151_v10  ;;  %p376_p3 = pnand %p375_p1, %p369_p13 }
  0x46   : > { %v155_v13 = vadd.f32 %v272_v11, %v152_v12 }
  0x48   : > { %vm156_vm2 = vcmp.gt.f32.partialorder %v155_v13, 0.6  ;;  %v275_v14 = vadd.f32 -0.6, %v155_v13 }
  0x49   : > { %v273_v15 = vsel %vm156_vm2, 1.0, %v438_v2 }
  0x4a   : > { %274 = vst [vmem:[%s133_s25 + $0x10] sm:$0xff] %v273_v15  ;;  %v162_v16 = vsel %vm156_vm2, %v275_v14, %v155_v13 }
  0x4b   : > { %v163_v18 = vmul.f32 0.25, %v162_v16 }
  0x4d   : > { %v166_v19 = vadd.f32 %v276_v17, %v163_v18 }
  0x4f   : > { %vm167_vm3 = vcmp.gt.f32.partialorder %v166_v19, 0.6 }
  0x50   : > { %v277_v20 = vsel %vm167_vm3, 1.0, %v438_v2 }
  0x51   : > { %278 = vst [vmem:[%s133_s25 + $0x18] sm:$0xff] %v277_v20 }
  0x52   : > { %379 = shalt.err (!%p376_p3)
}
  0x53   : > { %s380_s14 = scalar_lea.hbm %s573_s3, 512  ;;  %s384_s21 = scalar_lea.hbm %s618_s1, 1024 }
  0x54   : > { %p381_p5 = scmp.ne.s32.totalorder %s573_s3, %s380_s14  ;;  %p385_p9 = scmp.lt.u32.totalorder %s573_s3, %s618_s1 }
  0x55   : > { %p386_p0 = scmp.lt.u32.totalorder %s384_s21, %s380_s14  ;;  %p388_p6 = scmp.lt.u32.totalorder %s380_s14, %s573_s3 }
  0x56   : > { %p382_p7 = pnand %p381_p5, %p626_p11 }
  0x57   : > { %p387_p2 = por %p386_p0, %p385_p9 }
  0x58   : > { %p383_p8 = pneg %p382_p7 }
  0x59   : > { %p389_p12 = por %p388_p6, %p387_p2 }
  0x5b   : > { %p390_p13 = pnand %p389_p12, %p383_p8 }
  0x5d   : > { %393 = shalt.err (!%p390_p13)
}
  0x5e   : > { %s440_s26 = smov 128   ;;  %s441_s30 = smov 256  }
  0x5f   : > { %s442_s2 = smov 8  }
  0x60   : > { %285 = dma.vmem_to_hbm [thread:$0]  (%p626_p11), %s568_s17, 512, %s573_s3, %s173_s4, %s440_s26, %s441_s30, %s442_s2  }
  0x61 PF: > { %s200_s25 = sand.u32 1, %s420_s6   ;;  %p627_p4 = scmp.ne.s32.totalorder %s623_s19, 0 }
  0x62   : > { %p628_p10 = scmp.ge.s32.totalorder %s432_s9, 2  ;;  %s201_s27 = scalar_lea.sflag [#allocation4], %s200_s25 }
  0x64   : > { %p292_p1 = pnand %p628_p10, %p627_p4 }
  0x66   : > { %415 = dma.done.wait (!%p292_p1), %s201_s27, 512  }
  0x67   : > { %417 = vsyncadd (!%p292_p1), %s201_s27, 4294966784  ;;  %p14_p3 = scmp.ge.s32.totalorder %s478_s12, 4   ;;  %s629_s6 = smov %s424_s7 }
  0x68   : > { %s630_s7 = smov %s428_s8  ;;  %s631_s8 = smov %s490_s15 }
  0x69   : > { %s632_s9 = smov %s478_s12  ;;  %16 = sbr.rel (!%p14_p3) target bundleno = 5 (0x5), region = 75 }
  0x70   :  { %206 = vsyncpa [#allocation3], 1 }
  0x71   :  { %208 = vsyncpa [#allocation3 + $0x1], 1 }
  0x72   :  { %209 = vsyncpa [#allocation4], 1 }
  0x73   :  { %211 = vsyncpa [#allocation4 + $0x1], 1 }

</bundles_post_ra>
